<compile_context>
chip_gen: v6e
topology: v6e:2x2x1
jax: 0.10.0
libtpu: 0.0.40
codegen_flags: <defaults>
</compile_context>

<pallas_src>
import math

import jax
import jax.numpy as jnp
from jax.experimental import pallas as pl
from jax.experimental.pallas import tpu as pltpu


PACK = 16  # batch rows packed into one lane-dense row


def _round_up(n, m):
    return ((n + m - 1) // m) * m


def decoder_mlp_kernel(x_ref, w1_ref, b1_ref, w2_ref, b2_ref, o_ref):
    # x arrives in native f32; cast to bf16 only as MXU input (cheap VPU op,
    # hides under the tile DMA).  Accumulate both matmuls in f32.
    x16 = x_ref[...].astype(jnp.bfloat16)
    h = jnp.dot(x16, w1_ref[...], preferred_element_type=jnp.float32)
    h = jnp.maximum(h + b1_ref[...], 0.0)              # bias + ReLU in f32 (VPU)

    z = jnp.dot(h.astype(jnp.bfloat16), w2_ref[...],
                preferred_element_type=jnp.float32)
    z = z + b2_ref[...]

    # Sigmoid epilogue (logistic lands on the EUP slot); store full-lane f32.
    o_ref[...] = jax.nn.sigmoid(z).astype(o_ref.dtype)


def decoder_mlp_forward(x, w1, b1, w2, b2, *, block_batch=16384):
    """Fused DecoderMLP forward pass.

    x : (B, in_features) float32
    w1: (in_features, hidden_dim), b1: (hidden_dim,) or (1, hidden_dim)
    w2: (hidden_dim, latent_dim),  b2: (latent_dim,) or (1, latent_dim)
    returns (B, latent_dim) float32 in [0, 1]
    """
    B, in_features = x.shape
    hidden_dim = w1.shape[1]
    latent_dim = w2.shape[1]
    P = PACK

    x = jnp.asarray(x, jnp.float32)

    # Pad only to a multiple of the pack factor (<= 15 extra rows).  We do NOT
    # pad to a multiple of the batch tile: the grid uses pl.cdiv and Pallas
    # masks/drops out-of-bounds block writes for the partial last tile.
    Bp = _round_up(B, P)
    if Bp != B:
        x = jnp.pad(x, ((0, Bp - B), (0, 0)))
    R = Bp // P                                   # packed rows
    Kin, Hh, Lo = P * in_features, P * hidden_dim, P * latent_dim

    # (Bp, in) -> (R, P*in): free row-major relayout -> lane-dense DMA rows.
    xp = x.reshape(R, Kin)

    # Block-diagonal weights, built once in the wrapper and kept resident in
    # VMEM across grid steps (constant index_map).  Each packed sub-row sees
    # its own copy of W1/W2; off-diagonal blocks are exactly zero.
    eye = jnp.eye(P, dtype=jnp.float32)
    w1_bd = jnp.kron(eye, jnp.asarray(w1, jnp.float32)).astype(jnp.bfloat16)
    w2_bd = jnp.kron(eye, jnp.asarray(w2, jnp.float32)).astype(jnp.bfloat16)
    b1_t = jnp.tile(jnp.asarray(b1, jnp.float32).reshape(1, hidden_dim), (1, P))
    b2_t = jnp.tile(jnp.asarray(b2, jnp.float32).reshape(1, latent_dim), (1, P))

    # Packed-row tile: big enough to stream ~1 MB of x per grid step (amortizes
    # the ~0.35us/step grid overhead), multiple of 8 (f32 sublane) unless it
    # covers the whole (small) packed batch.
    desired_p = max(8, int(block_batch) // P)
    tb = R if desired_p >= R else max(8, (desired_p // 8) * 8)
    grid = (pl.cdiv(R, tb),)

    # Scoped-VMEM budget: double-buffered streamed tiles + resident weights
    # + live intermediates.  Capped at 32 MiB so it is safe on v5e/v6e/v7x.
    need = (
        2 * tb * Kin * 4                     # x tiles (f32, double-buffered)
        + 2 * tb * Lo * 4                    # out tiles (f32, double-buffered)
        + 2 * (Kin * Hh + Hh * Lo) * 2       # block-diagonal weights (bf16)
        + 2 * (Hh + Lo) * 4                  # biases (f32)
        + tb * Kin * 2                       # x bf16 cast (live)
        + tb * Hh * (4 + 2)                  # h f32 + h bf16 (live)
        + tb * Lo * 4                        # z f32 (live)
    )
    vmem_limit = int(min(32 * 1024 * 1024, max(4 * 1024 * 1024, 2 * need)))

    cost = pl.CostEstimate(
        flops=int(2 * R * (Kin * Hh + Hh * Lo)),
        transcendentals=int(Bp * latent_dim),
        bytes_accessed=int(
            R * Kin * 4                       # x (f32)
            + (Kin * Hh + Hh * Lo) * 2        # weights (bf16)
            + (Hh + Lo) * 4                   # biases (f32)
            + R * Lo * 4                      # output (f32)
        ),
    )

    out = pl.pallas_call(
        decoder_mlp_kernel,
        out_shape=jax.ShapeDtypeStruct((R, Lo), jnp.float32),
        grid_spec=pltpu.PrefetchScalarGridSpec(
            num_scalar_prefetch=0,
            grid=grid,
            in_specs=[
                # Streamed lane-dense batch tile of the packed input.
                pl.BlockSpec((tb, Kin), lambda i: (i, 0)),
                # Weights/biases: whole-array blocks with constant index_map
                # -> fetched once, resident across grid steps.
                pl.BlockSpec((Kin, Hh), lambda i: (0, 0)),
                pl.BlockSpec((1, Hh), lambda i: (0, 0)),
                pl.BlockSpec((Hh, Lo), lambda i: (0, 0)),
                pl.BlockSpec((1, Lo), lambda i: (0, 0)),
            ],
            out_specs=pl.BlockSpec((tb, Lo), lambda i: (i, 0)),
        ),
        compiler_params=pltpu.CompilerParams(
            dimension_semantics=("parallel",),
            vmem_limit_bytes=vmem_limit,
        ),
        cost_estimate=cost,
    )(xp, w1_bd, b1_t, w2_bd, b2_t)

    # (R, P*latent) -> (Bp, latent) is a free row-major relayout; drop pad rows.
    return out.reshape(Bp, latent_dim)[:B]


def init_linear_params(key, fan_in, fan_out):
    """Deterministic init mimicking torch.nn.Linear (uniform +/- 1/sqrt(fan_in)).

    Returns weight (fan_in, fan_out) (transposed vs. torch) and bias (1, fan_out).
    """
    kw, kb = jax.random.split(key)
    bound = 1.0 / math.sqrt(fan_in)
    w = jax.random.uniform(kw, (fan_in, fan_out), jnp.float32, -bound, bound)
    b = jax.random.uniform(kb, (1, fan_out), jnp.float32, -bound, bound)
    return w, b


if __name__ == "__main__":
    # Small shapes consistent with the module: batch=8, in_features=16,
    # hidden_dim=32, latent_dim=8.
    B, in_features, hidden_dim, latent_dim = 8, 16, 32, 8

    key = jax.random.PRNGKey(0)
    kx, kx2, k1, k2 = jax.random.split(key, 4)

    x = jax.random.normal(kx, (B, in_features), jnp.float32)
    w1, b1 = init_linear_params(k1, in_features, hidden_dim)
    w2, b2 = init_linear_params(k2, hidden_dim, latent_dim)

    out = jax.block_until_ready(decoder_mlp_forward(x, w1, b1, w2, b2))

    # Pure-JAX f32 reference (bf16 matmul inputs => loose-but-tight-enough tol).
    h_ref = jnp.maximum(x @ w1 + b1, 0.0)
    y_ref = jax.nn.sigmoid(h_ref @ w2 + b2)
    assert out.shape == (B, latent_dim)
    assert jnp.allclose(out, y_ref, atol=2e-2), "mismatch vs reference"

    # Exercise the multi-step grid + partial-last-block path: B=300 is not a
    # multiple of 16 (small pad) and not a multiple of the packed tile (cdiv).
    B2 = 300
    x2 = jax.random.normal(kx2, (B2, in_features), jnp.float32)
    out2 = jax.block_until_ready(
        decoder_mlp_forward(x2, w1, b1, w2, b2, block_batch=128))
    h2_ref = jnp.maximum(x2 @ w1 + b1, 0.0)
    y2_ref = jax.nn.sigmoid(h2_ref @ w2 + b2)
    assert out2.shape == (B2, latent_dim)
    assert jnp.allclose(out2, y2_ref, atol=2e-2), "mismatch vs reference (tiled)"

    print("KERNEL_OK")
</pallas_src>

<mosaic_0001>
module attributes {stable_mosaic.version = 11 : i64} {
  func.func @decoder_mlp_kernel(%arg0: i32, %arg1: memref<1x256xf32, #tpu.memory_space<vmem>>, %arg2: memref<256x512xbf16, #tpu.memory_space<vmem>>, %arg3: memref<1x512xf32, #tpu.memory_space<vmem>>, %arg4: memref<512x128xbf16, #tpu.memory_space<vmem>>, %arg5: memref<1x128xf32, #tpu.memory_space<vmem>>, %arg6: memref<1x128xf32, #tpu.memory_space<vmem>>) attributes {dimension_semantics = [#tpu.dimension_semantics<parallel>], iteration_bounds = array<i64: 1>, scalar_prefetch = 0 : i64, scratch_operands = 0 : i64, tpu.core_type = #tpu.core_type<tc>, window_params = [{transform_indices = @transform_0, window_bounds = array<i64: 1, 256>}, {pipeline_mode = #tpu.pipeline_mode<synchronous>, transform_indices = @transform_1, window_bounds = array<i64: 256, 512>}, {pipeline_mode = #tpu.pipeline_mode<synchronous>, transform_indices = @transform_2, window_bounds = array<i64: 1, 512>}, {pipeline_mode = #tpu.pipeline_mode<synchronous>, transform_indices = @transform_3, window_bounds = array<i64: 512, 128>}, {pipeline_mode = #tpu.pipeline_mode<synchronous>, transform_indices = @transform_4, window_bounds = array<i64: 1, 128>}, {transform_indices = @transform_5, window_bounds = array<i64: 1, 128>}]} {
    %c0 = arith.constant 0 : index
    %c0_0 = arith.constant 0 : index
    %0 = vector.load %arg1[%c0, %c0_0] : memref<1x256xf32, #tpu.memory_space<vmem>>, vector<1x256xf32>
    %1 = arith.truncf %0 : vector<1x256xf32> to vector<1x256xbf16>
    %c0_1 = arith.constant 0 : index
    %c0_2 = arith.constant 0 : index
    %2 = vector.load %arg2[%c0_1, %c0_2] : memref<256x512xbf16, #tpu.memory_space<vmem>>, vector<256x512xbf16>
    %cst = arith.constant dense<0.000000e+00> : vector<1x512xf32>
    %3 = tpu.matmul %1, %2, %cst {dimension_numbers = #tpu.dot_dimension_numbers<[1], [0], [0], [1], [0, 0, 1, 1], [], []>} : vector<1x256xbf16>, vector<256x512xbf16>, vector<1x512xf32> -> vector<1x512xf32>
    %c0_3 = arith.constant 0 : index
    %c0_4 = arith.constant 0 : index
    %4 = vector.load %arg3[%c0_3, %c0_4] : memref<1x512xf32, #tpu.memory_space<vmem>>, vector<1x512xf32>
    %5 = arith.addf %3, %4 : vector<1x512xf32>
    %cst_5 = arith.constant 0.000000e+00 : f32
    %6 = vector.broadcast %cst_5 : f32 to vector<1x512xf32>
    %7 = arith.maximumf %5, %6 : vector<1x512xf32>
    %8 = arith.truncf %7 : vector<1x512xf32> to vector<1x512xbf16>
    %c0_6 = arith.constant 0 : index
    %c0_7 = arith.constant 0 : index
    %9 = vector.load %arg4[%c0_6, %c0_7] : memref<512x128xbf16, #tpu.memory_space<vmem>>, vector<512x128xbf16>
    %cst_8 = arith.constant dense<0.000000e+00> : vector<1x128xf32>
    %10 = tpu.matmul %8, %9, %cst_8 {dimension_numbers = #tpu.dot_dimension_numbers<[1], [0], [0], [1], [0, 0, 1, 1], [], []>} : vector<1x512xbf16>, vector<512x128xbf16>, vector<1x128xf32> -> vector<1x128xf32>
    %c0_9 = arith.constant 0 : index
    %c0_10 = arith.constant 0 : index
    %11 = vector.load %arg5[%c0_9, %c0_10] : memref<1x128xf32, #tpu.memory_space<vmem>>, vector<1x128xf32>
    %12 = arith.addf %10, %11 : vector<1x128xf32>
    %13 = arith.negf %12 : vector<1x128xf32>
    %14 = math.exp %13 : vector<1x128xf32>
    %cst_11 = arith.constant 1.000000e+00 : f32
    %15 = vector.broadcast %cst_11 : f32 to vector<1x128xf32>
    %16 = arith.addf %15, %14 : vector<1x128xf32>
    %17 = arith.divf %15, %16 : vector<1x128xf32>
    %c0_12 = arith.constant 0 : index
    %c0_13 = arith.constant 0 : index
    %18 = vector.load %arg6[%c0_12, %c0_13] : memref<1x128xf32, #tpu.memory_space<vmem>>, vector<1x128xf32>
    tpu.vector_store %arg6[%c0_12, %c0_13], %17 {strides = array<i32>} : memref<1x128xf32, #tpu.memory_space<vmem>>, vector<1x128xf32>,
    return
  }
  func.func @transform_0(%arg0: i32) -> (i32, i32) {
    %c0_i32 = arith.constant 0 : i32
    %c0_i32_0 = arith.constant 0 : i32
    return %arg0, %c0_i32 : i32, i32
  }
  func.func @transform_1(%arg0: i32) -> (i32, i32) {
    %c0_i32 = arith.constant 0 : i32
    %c0_i32_0 = arith.constant 0 : i32
    %c0_i32_1 = arith.constant 0 : i32
    return %c0_i32, %c0_i32_0 : i32, i32
  }
  func.func @transform_2(%arg0: i32) -> (i32, i32) {
    %c0_i32 = arith.constant 0 : i32
    %c0_i32_0 = arith.constant 0 : i32
    %c0_i32_1 = arith.constant 0 : i32
    return %c0_i32, %c0_i32_0 : i32, i32
  }
  func.func @transform_3(%arg0: i32) -> (i32, i32) {
    %c0_i32 = arith.constant 0 : i32
    %c0_i32_0 = arith.constant 0 : i32
    %c0_i32_1 = arith.constant 0 : i32
    return %c0_i32, %c0_i32_0 : i32, i32
  }
  func.func @transform_4(%arg0: i32) -> (i32, i32) {
    %c0_i32 = arith.constant 0 : i32
    %c0_i32_0 = arith.constant 0 : i32
    %c0_i32_1 = arith.constant 0 : i32
    return %c0_i32, %c0_i32_0 : i32, i32
  }
  func.func @transform_5(%arg0: i32) -> (i32, i32) {
    %c0_i32 = arith.constant 0 : i32
    %c0_i32_0 = arith.constant 0 : i32
    return %arg0, %c0_i32 : i32, i32
  }
}

</mosaic_0001>

<bundles_post_ra>
// kernel: tpu_custom_call.1
= control target key start
LH: loop header
LB: loop body
LE: loop exit
PB: predicated region body
PF: predicated region fallthrough
CT: control target
= control target key end

     0   :  { %10 = vsyncpa [#allocation3], 0  ;;  %s1405_s0 = inlined_call_operand.hbm [shape: f32[1,256], index: 0, kind: input, shape index: {}]   ;;  %s1406_s1 = inlined_call_operand.hbm [shape: bf16[256,512], index: 1, kind: input, shape index: {}]   ;;  %s1407_s2 = inlined_call_operand.hbm [shape: f32[1,512], index: 2, kind: input, shape index: {}]   ;;  %s1408_s3 = inlined_call_operand.hbm [shape: bf16[512,128], index: 3, kind: input, shape index: {}]   ;;  %s1409_s4 = inlined_call_operand.vmem [shape: f32[1,128], index: 4, kind: input, shape index: {}]   ;;  %s1410_s5 = inlined_call_operand.hbm [shape: f32[1,128], index: 5, kind: output, shape index: {}]  }
   0x1   :  { %11 = vsyncpa [#allocation6], 0 }
   0x2   :  { %12 = vsyncpa [#allocation9], 0 }
   0x3   :  { %13 = vsyncpa [#allocation4], 0  ;;  %s1334_s18 = smov [#allocation5]  }
   0x4   :  { %s29_s19 = sshll.u32 %s1334_s18, 4  ;;  %s30_s19 = int_to_ptr.vmem [resolvable:$true] %s29_s19 }
   0x5   :  { %s1234_s20 = scalar_lea.vmem %s30_s19, 8192  ;;  %p1239_p1 = scmp.lt.s32.totalorder %s30_s19, %s30_s19 }
   0x6   :  { %p1235_p0 = scmp.ne.s32.totalorder %s30_s19, %s1234_s20  ;;  %p1240_p2 = scmp.lt.s32.totalorder %s1234_s20, %s1234_s20 }
   0x8   :  { %p1241_p3 = por %p1240_p2, %p1239_p1 }
   0xa   :  { %p1242_p4 = pnand %p1241_p3, %p1235_p0 }
   0xc   :  { %1245 = shalt.err (!%p1242_p4)
}
   0xd   :  { %s1335_s21 = smov 256   ;;  %s1336_s22 = smov 16  }
   0xe   :  { %35 = dma.hbm_to_vmem [thread:$0]  %s1406_s1, 8192, %s30_s19, [#allocation6], %s1335_s21, %s1335_s21, %s1336_s22  }
   0xf   :  { %s1337_s25 = smov [#allocation2]   ;;  %s1338_s27 = smov [#allocation7]  }
  0x10   :  { %s20_s26 = sshll.u32 %s1337_s25, 4  ;;  %s42_s28 = sshll.u32 %s1338_s27, 4  ;;  %s21_s26 = int_to_ptr.vmem [resolvable:$true] %s20_s26  ;;  %s43_s28 = int_to_ptr.vmem [resolvable:$true] %s42_s28 }
  0x11   :  { %s1254_s29 = scalar_lea.vmem %s21_s26, 32  ;;  %p1259_p6 = scmp.lt.s32.totalorder %s21_s26, %s21_s26 }
  0x12   :  { %p1255_p5 = scmp.ne.s32.totalorder %s21_s26, %s1254_s29  ;;  %p1260_p7 = scmp.lt.s32.totalorder %s1254_s29, %s1254_s29 }
  0x14   :  { %p1261_p8 = por %p1260_p7, %p1259_p6 }
  0x16   :  { %p1262_p9 = pnand %p1261_p8, %p1255_p5 }
  0x18   :  { %1265 = shalt.err (!%p1262_p9)
}
  0x19   :  { %23 = dma.hbm_to_vmem [thread:$0]  %s1405_s0, 32, %s21_s26, [#allocation3]  }
  0x1a   :  { %s1274_s7 = scalar_lea.vmem %s43_s28, 64  ;;  %p1279_p11 = scmp.lt.s32.totalorder %s43_s28, %s43_s28 }
  0x1b   :  { %p1275_p10 = scmp.ne.s32.totalorder %s43_s28, %s1274_s7  ;;  %p1280_p12 = scmp.lt.s32.totalorder %s1274_s7, %s1274_s7 }
  0x1d   :  { %p1281_p13 = por %p1280_p12, %p1279_p11 }
  0x1f   :  { %p1282_p0 = pnand %p1281_p13, %p1275_p10 }
  0x21   :  { %1285 = shalt.err (!%p1282_p0)
}
  0x22   :  { %45 = dma.hbm_to_vmem [thread:$0]  %s1407_s2, 64, %s43_s28, [#allocation6]  }
  0x23   :  { %s1339_s9 = smov [#allocation8]  }
  0x24   :  { %s51_s10 = sshll.u32 %s1339_s9, 4  ;;  %s52_s10 = int_to_ptr.vmem [resolvable:$true] %s51_s10 }
  0x25   :  { %s1294_s11 = scalar_lea.vmem %s52_s10, 4096  ;;  %p1299_p2 = scmp.lt.s32.totalorder %s52_s10, %s52_s10 }
  0x26   :  { %p1295_p1 = scmp.ne.s32.totalorder %s52_s10, %s1294_s11  ;;  %p1300_p3 = scmp.lt.s32.totalorder %s1294_s11, %s1294_s11 }
  0x28   :  { %p1301_p4 = por %p1300_p3, %p1299_p2 }
  0x2a   :  { %p1302_p5 = pnand %p1301_p4, %p1295_p1 }
  0x2c   :  { %1305 = shalt.err (!%p1302_p5)
}
  0x2d   :  { %s1340_s0 = smov 64   ;;  %s1341_s12 = smov 4  }
  0x2e   :  { %57 = dma.hbm_to_vmem [thread:$0]  %s1408_s3, 4096, %s52_s10, [#allocation9], %s1340_s0, %s1340_s0, %s1341_s12  }
  0x2f   :  { %1326 = dma.done.wait [#allocation3], 32  }
  0x30   :  { %1327 = vsyncadd [#allocation3], 4294967264 }
  0x31   :  { %1328 = dma.done.wait [#allocation6], 8256  }
  0x32   :  { %1329 = vsyncadd [#allocation6], 4294959040 }
  0x33   :  { %1330 = dma.done.wait [#allocation9], 4096  }
  0x34   :  { %1331 = vsyncadd [#allocation9], 4294963200  ;;  %v1094_v0 = vld [vmem:[#allocation5 + $0xe4] ss:$16 sps:$4 sm:$0xff]   ;;  %v1096_v1 = vld [vmem:[#allocation5 + $0xec] ss:$16 sps:$4 sm:$0xff]   ;;  %v75_v36 = vlaneseq }
  0x35   :  { %493 = vmatprep.subr.bf16.mxu0 %v1094_v0  ;;  %v1098_v2 = vld [vmem:[#allocation5 + $0xe0] ss:$16 sps:$4 sm:$0xff]   ;;  %v1099_v3 = vld [vmem:[#allocation5 + $0xe8] ss:$16 sps:$4 sm:$0xff]   ;;  %534 = vmatprep.subr.bf16.mxu1 %v1096_v1  ;;  %v1100_v4 = vld [vmem:[#allocation5 + $0xc4] ss:$16 sps:$4 sm:$0xff]  }
  0x36   :  { %494 = vmatpush1.bf16.msra.mxu0 %v1098_v2  ;;  %535 = vmatpush1.bf16.msra.mxu1 %v1099_v3  ;;  %v1102_v5 = vld [vmem:[#allocation5 + $0xcc] ss:$16 sps:$4 sm:$0xff]   ;;  %v1104_v6 = vld [vmem:[#allocation5 + $0xc0] ss:$16 sps:$4 sm:$0xff]   ;;  %v1105_v7 = vld [vmem:[#allocation5 + $0xc8] ss:$16 sps:$4 sm:$0xff]  }
  0x37   :  { %495 = vmatprep.subr.bf16.mxu0 %v1100_v4  ;;  %536 = vmatprep.subr.bf16.mxu1 %v1102_v5  ;;  %v1106_v8 = vld [vmem:[#allocation5 + $0xa4] ss:$16 sps:$4 sm:$0xff]   ;;  %v1108_v9 = vld [vmem:[#allocation5 + $0xac] ss:$16 sps:$4 sm:$0xff]   ;;  %v1110_v10 = vld [vmem:[#allocation5 + $0xa0] ss:$16 sps:$4 sm:$0xff]  }
  0x38   :  { %v1111_v11 = vld [vmem:[#allocation5 + $0xa8] ss:$16 sps:$4 sm:$0xff]   ;;  %v1112_v12 = vld [vmem:[#allocation5 + $0x84] ss:$16 sps:$4 sm:$0xff]   ;;  %v1114_v13 = vld [vmem:[#allocation5 + $0x8c] ss:$16 sps:$4 sm:$0xff]  }
  0x39   :  { %v1116_v14 = vld [vmem:[#allocation5 + $0x80] ss:$16 sps:$4 sm:$0xff]   ;;  %v1117_v15 = vld [vmem:[#allocation5 + $0x88] ss:$16 sps:$4 sm:$0xff]   ;;  %v1118_v16 = vld [vmem:[#allocation5 + $0x64] ss:$16 sps:$4 sm:$0xff]  }
  0x3a   :  { %496 = vmatpush1.bf16.msra.mxu0 %v1104_v6  ;;  %537 = vmatpush1.bf16.msra.mxu1 %v1105_v7  ;;  %v1120_v17 = vld [vmem:[#allocation5 + $0x6c] ss:$16 sps:$4 sm:$0xff]   ;;  %v1122_v18 = vld [vmem:[#allocation5 + $0x60] ss:$16 sps:$4 sm:$0xff]   ;;  %v1123_v19 = vld [vmem:[#allocation5 + $0x68] ss:$16 sps:$4 sm:$0xff]  }
  0x3b   :  { %497 = vmatprep.subr.bf16.mxu0 %v1106_v8  ;;  %538 = vmatprep.subr.bf16.mxu1 %v1108_v9  ;;  %v1124_v20 = vld [vmem:[#allocation5 + $0x44] ss:$16 sps:$4 sm:$0xff]   ;;  %v1126_v21 = vld [vmem:[#allocation5 + $0x4c] ss:$16 sps:$4 sm:$0xff]   ;;  %v1128_v22 = vld [vmem:[#allocation5 + $0x40] ss:$16 sps:$4 sm:$0xff]  }
  0x3c   :  { %v1129_v23 = vld [vmem:[#allocation5 + $0x48] ss:$16 sps:$4 sm:$0xff]   ;;  %v1130_v24 = vld [vmem:[#allocation5 + $0x24] ss:$16 sps:$4 sm:$0xff]   ;;  %v1132_v25 = vld [vmem:[#allocation5 + $0x2c] ss:$16 sps:$4 sm:$0xff]  }
  0x3d   :  { %v1134_v26 = vld [vmem:[#allocation5 + $0x20] ss:$16 sps:$4 sm:$0xff]   ;;  %v1135_v27 = vld [vmem:[#allocation5 + $0x28] ss:$16 sps:$4 sm:$0xff]   ;;  %v1136_v28 = vld [vmem:[#allocation5 + $0x4] ss:$16 sps:$4 sm:$0xff]  }
  0x3e   :  { %498 = vmatpush1.bf16.msra.mxu0 %v1110_v10  ;;  %539 = vmatpush1.bf16.msra.mxu1 %v1111_v11  ;;  %v1138_v29 = vld [vmem:[#allocation5 + $0xc] ss:$16 sps:$4 sm:$0xff]   ;;  %v1140_v30 = vld [vmem:[#allocation5] ss:$16 sps:$4 sm:$0xff]   ;;  %v1141_v31 = vld [vmem:[#allocation5 + $0x8] ss:$16 sps:$4 sm:$0xff]  }
  0x3f   :  { %499 = vmatprep.subr.bf16.mxu0 %v1112_v12  ;;  %540 = vmatprep.subr.bf16.mxu1 %v1114_v13  ;;  %v1142_v32 = vld [vmem:[#allocation5 + $0x1e4] ss:$16 sps:$4 sm:$0xff]   ;;  %v1144_v33 = vld [vmem:[#allocation5 + $0x1ec] ss:$16 sps:$4 sm:$0xff]   ;;  %v1146_v34 = vld [vmem:[#allocation5 + $0x1e0] ss:$16 sps:$4 sm:$0xff]  }
  0x40   :  { %v1147_v35 = vld [vmem:[#allocation5 + $0x1e8] ss:$16 sps:$4 sm:$0xff]   ;;  %v1148_v37 = vld [vmem:[#allocation5 + $0x1c4] ss:$16 sps:$4 sm:$0xff]   ;;  %v1150_v38 = vld [vmem:[#allocation5 + $0x1cc] ss:$16 sps:$4 sm:$0xff]  }
  0x41   :  { %v1152_v39 = vld [vmem:[#allocation5 + $0x1c0] ss:$16 sps:$4 sm:$0xff]   ;;  %v1385_v40 = vshrl.u32 %v75_v36, 7  ;;  %v1153_v41 = vld [vmem:[#allocation5 + $0x1c8] ss:$16 sps:$4 sm:$0xff]   ;;  %s1342_s15 = smov [#allocation10]  }
  0x42   :  { %500 = vmatpush1.bf16.msra.mxu0 %v1116_v14  ;;  %541 = vmatpush1.bf16.msra.mxu1 %v1117_v15  ;;  %v1154_v42 = vld [vmem:[#allocation5 + $0x1a4] ss:$16 sps:$4 sm:$0xff]   ;;  %v1156_v43 = vld [vmem:[#allocation5 + $0x1ac] ss:$16 sps:$4 sm:$0xff]   ;;  %v1158_v44 = vld [vmem:[#allocation5 + $0x1a0] ss:$16 sps:$4 sm:$0xff]  }
  0x43   :  { %501 = vmatprep.subr.bf16.mxu0 %v1118_v16  ;;  %542 = vmatprep.subr.bf16.mxu1 %v1120_v17  ;;  %v1159_v45 = vld [vmem:[#allocation5 + $0x1a8] ss:$16 sps:$4 sm:$0xff]   ;;  %v81_v46 = vsub.s32 1, %v1385_v40  ;;  %v1160_v47 = vld [vmem:[#allocation5 + $0x184] ss:$16 sps:$4 sm:$0xff]   ;;  %v77_v51 = vsub.s32 0, %v1385_v40 }
  0x44   :  { %v1162_v48 = vld [vmem:[#allocation5 + $0x18c] ss:$16 sps:$4 sm:$0xff]   ;;  %v1164_v49 = vld [vmem:[#allocation5 + $0x180] ss:$16 sps:$4 sm:$0xff]   ;;  %v1165_v52 = vld [vmem:[#allocation5 + $0x188] ss:$16 sps:$4 sm:$0xff]  }
  0x45   :  { %v73_v50 = vld [vmem:[#allocation2] sm:$0x3]  ;;  %v1166_v54 = vld [vmem:[#allocation5 + $0x164] ss:$16 sps:$4 sm:$0xff]   ;;  %v1170_v57 = vld [vmem:[#allocation5 + $0x160] ss:$16 sps:$4 sm:$0xff]  }
  0x46   :  { %502 = vmatpush1.bf16.msra.mxu0 %v1122_v18  ;;  %543 = vmatpush1.bf16.msra.mxu1 %v1123_v19  ;;  %v82_v53 = vrot.slane %v73_v50, %v81_v46  ;;  %v1168_v55 = vld [vmem:[#allocation5 + $0x16c] ss:$16 sps:$4 sm:$0xff]   ;;  %v1171_v58 = vld [vmem:[#allocation5 + $0x168] ss:$16 sps:$4 sm:$0xff]   ;;  %v1172_v59 = vld [vmem:[#allocation5 + $0x144] ss:$16 sps:$4 sm:$0xff]   ;;  %v78_v7 = vrot.slane %v73_v50, %v77_v51 }
  0x47   :  { %503 = vmatprep.subr.bf16.mxu0 %v1124_v20  ;;  %544 = vmatprep.subr.bf16.mxu1 %v1126_v21  ;;  %v1174_v60 = vld [vmem:[#allocation5 + $0x14c] ss:$16 sps:$4 sm:$0xff]   ;;  %v1176_v61 = vld [vmem:[#allocation5 + $0x140] ss:$16 sps:$4 sm:$0xff]   ;;  %v1177_v62 = vld [vmem:[#allocation5 + $0x148] ss:$16 sps:$4 sm:$0xff]  }
  0x48   :  { %v86_v56 = vpack.c.bf16 %v82_v53, %v82_v53  ;;  %v1178_v63 = vld [vmem:[#allocation5 + $0x124] ss:$16 sps:$4 sm:$0xff]   ;;  %v1180_v0 = vld [vmem:[#allocation5 + $0x12c] ss:$16 sps:$4 sm:$0xff]   ;;  %v1182_v1 = vld [vmem:[#allocation5 + $0x120] ss:$16 sps:$4 sm:$0xff]   ;;  %v85_v11 = vpack.c.bf16 %v78_v7, %v78_v7 }
  0x49   :  { %v1183_v2 = vld [vmem:[#allocation5 + $0x128] ss:$16 sps:$4 sm:$0xff]   ;;  %v1184_v3 = vld [vmem:[#allocation5 + $0x104] ss:$16 sps:$4 sm:$0xff]   ;;  %v1186_v4 = vld [vmem:[#allocation5 + $0x10c] ss:$16 sps:$4 sm:$0xff]  }
  0x4a   :  { %504 = vmatpush1.bf16.msra.mxu0 %v1128_v22  ;;  %545 = vmatpush1.bf16.msra.mxu1 %v1129_v23  ;;  %v1188_v5 = vld [vmem:[#allocation5 + $0x100] ss:$16 sps:$4 sm:$0xff]   ;;  %v1189_v6 = vld [vmem:[#allocation5 + $0x108] ss:$16 sps:$4 sm:$0xff]   ;;  %s933_s16 = sshll.u32 %s1342_s15, 4  ;;  %s934_s16 = int_to_ptr.vmem [resolvable:$true] %s933_s16 }
  0x4b   :  { %505 = vmatprep.subr.bf16.mxu0 %v1130_v24  ;;  %546 = vmatprep.subr.bf16.mxu1 %v1132_v25  ;;  %v1190_v8 = vld [vmem:[#allocation8 + $0x78] sm:$0xff]   ;;  %v1194_v13 = vld [vmem:[#allocation8 + $0x70] sm:$0xff]   ;;  %v1198_v17 = vld [vmem:[#allocation8 + $0x68] sm:$0xff]   ;;  %s1310_s17 = scalar_lea.vmem %s934_s16, 32  ;;  %p1311_p7 = scmp.lt.s32.totalorder %s934_s16, %s934_s16 }
  0x4c   :  { %525 = vmatprep.mubr.bf16.mxu0 %v86_v56  ;;  %566 = vmatprep.mubr.bf16.mxu1 %v86_v56  ;;  %v1191_v9 = vld [vmem:[#allocation8 + $0xf8] sm:$0xff]   ;;  %v1195_v14 = vld [vmem:[#allocation8 + $0xf0] sm:$0xff]   ;;  %v1199_v18 = vld [vmem:[#allocation8 + $0xe8] sm:$0xff]  }
  0x4d   :  { %v1192_v10 = vld [vmem:[#allocation8 + $0x38] sm:$0xff]   ;;  %v1196_v15 = vld [vmem:[#allocation8 + $0x30] sm:$0xff]   ;;  %v1200_v19 = vld [vmem:[#allocation8 + $0x28] sm:$0xff]  }
  0x4e   :  { %506 = vmatpush1.bf16.msra.mxu0 %v1134_v26  ;;  %547 = vmatpush1.bf16.msra.mxu1 %v1135_v27  ;;  %v1193_v12 = vld [vmem:[#allocation8 + $0xb8] sm:$0xff]   ;;  %v1197_v16 = vld [vmem:[#allocation8 + $0xb0] sm:$0xff]   ;;  %v1201_v20 = vld [vmem:[#allocation8 + $0xa8] sm:$0xff]  }
  0x4f   :  { %507 = vmatprep.subr.bf16.mxu0 %v1136_v28  ;;  %548 = vmatprep.subr.bf16.mxu1 %v1138_v29  ;;  %v1202_v21 = vld [vmem:[#allocation8 + $0x60] sm:$0xff]   ;;  %v1206_v25 = vld [vmem:[#allocation8 + $0x58] sm:$0xff]   ;;  %v1210_v29 = vld [vmem:[#allocation8 + $0x50] sm:$0xff]  }
  0x50   :  { %v1203_v22 = vld [vmem:[#allocation8 + $0xe0] sm:$0xff]   ;;  %v1207_v26 = vld [vmem:[#allocation8 + $0xd8] sm:$0xff]   ;;  %v1217_v36 = vld [vmem:[#allocation8 + $0x88] sm:$0xff]  }
  0x51   :  { %v1204_v23 = vld [vmem:[#allocation8 + $0x20] sm:$0xff]   ;;  %v1208_v27 = vld [vmem:[#allocation8 + $0x18] sm:$0xff]  }
  0x52   :  { %508 = vmatpush1.bf16.msra.mxu0 %v1140_v30  ;;  %549 = vmatpush1.bf16.msra.mxu1 %v1141_v31  ;;  %v1205_v24 = vld [vmem:[#allocation8 + $0xa0] sm:$0xff]   ;;  %v1209_v28 = vld [vmem:[#allocation8 + $0x98] sm:$0xff]   ;;  %v1211_v30 = vld [vmem:[#allocation8 + $0xd0] sm:$0xff]  }
  0x53   :  { %509 = vmatprep.subr.bf16.mxu0 %v1142_v32  ;;  %550 = vmatprep.subr.bf16.mxu1 %v1144_v33  ;;  %v1212_v31 = vld [vmem:[#allocation8 + $0x10] sm:$0xff]   ;;  %v1214_v33 = vld [vmem:[#allocation8 + $0x48] sm:$0xff]  }
  0x54   :  { %v1213_v32 = vld [vmem:[#allocation8 + $0x90] sm:$0xff]  }
  0x56   :  { %510 = vmatpush2.bf16.msra.mxu0 %v1146_v34  ;;  %551 = vmatpush2.bf16.msra.mxu1 %v1147_v35  ;;  %v1215_v34 = vld [vmem:[#allocation8 + $0xc8] sm:$0xff]  }
  0x57   :  { %511 = vmatprep.subr.bf16.mxu0 %v1148_v37  ;;  %552 = vmatprep.subr.bf16.mxu1 %v1150_v38  ;;  %v1216_v35 = vld [vmem:[#allocation8 + $0x8] sm:$0xff]   ;;  %v1218_v37 = vld [vmem:[#allocation8 + $0x40] sm:$0xff]  }
  0x58   :  { %v1219_v38 = vld [vmem:[#allocation8 + $0xc0] sm:$0xff]  }
  0x5a   :  { %512 = vmatpush2.bf16.msra.mxu0 %v1152_v39  ;;  %553 = vmatpush2.bf16.msra.mxu1 %v1153_v41  ;;  %v1220_v39 = vld [vmem:[#allocation8] sm:$0xff]  }
  0x5b   :  { %513 = vmatprep.subr.bf16.mxu0 %v1154_v42  ;;  %554 = vmatprep.subr.bf16.mxu1 %v1156_v43  ;;  %v1221_v41 = vld [vmem:[#allocation8 + $0x80] sm:$0xff]   ;;  %v483_v42 = vsub.s32 2, %v1385_v40  ;;  %v151_v43 = vld [vmem:[#allocation7] sm:$0xf] }
  0x5e   :  { %514 = vmatpush2.bf16.msra.mxu0 %v1158_v44  ;;  %555 = vmatpush2.bf16.msra.mxu1 %v1159_v45  ;;  %v487_v44 = vsub.s32 3, %v1385_v40  ;;  %v476_v45 = vrot.slane %v151_v43, %v77_v51 }
  0x5f   :  { %515 = vmatprep.subr.bf16.mxu0 %v1160_v47  ;;  %556 = vmatprep.subr.bf16.mxu1 %v1162_v48  ;;  %v484_v47 = vrot.slane %v151_v43, %v483_v42  ;;  %v480_v48 = vrot.slane %v151_v43, %v81_v46 }
  0x62   :  { %516 = vmatpush2.bf16.msra.mxu0 %v1164_v49  ;;  %557 = vmatpush2.bf16.msra.mxu1 %v1165_v52  ;;  %v488_v49 = vrot.slane %v151_v43, %v487_v44 }
  0x63   :  { %517 = vmatprep.subr.bf16.mxu0 %v1166_v54  ;;  %558 = vmatprep.subr.bf16.mxu1 %v1168_v55 }
  0x66   :  { %518 = vmatpush2.bf16.msra.mxu0 %v1170_v57  ;;  %559 = vmatpush2.bf16.msra.mxu1 %v1171_v58 }
  0x67   :  { %519 = vmatprep.subr.bf16.mxu0 %v1172_v59  ;;  %560 = vmatprep.subr.bf16.mxu1 %v1174_v60 }
  0x6a   :  { %520 = vmatpush2.bf16.msra.mxu0 %v1176_v61  ;;  %561 = vmatpush2.bf16.msra.mxu1 %v1177_v62 }
  0x6b   :  { %521 = vmatprep.subr.bf16.mxu0 %v1178_v63  ;;  %562 = vmatprep.subr.bf16.mxu1 %v1180_v0 }
  0x6e   :  { %522 = vmatpush2.bf16.msra.mxu0 %v1182_v1  ;;  %563 = vmatpush2.bf16.msra.mxu1 %v1183_v2 }
  0x6f   :  { %523 = vmatprep.subr.bf16.mxu0 %v1184_v3  ;;  %564 = vmatprep.subr.bf16.mxu1 %v1186_v4 }
  0x72   :  { %524 = vmatpush2.bf16.msra.mxu0 %v1188_v5  ;;  %565 = vmatpush2.bf16.msra.mxu1 %v1189_v6  ;;  %v647_v6 = vld [vmem:[%s1409_s4] sm:$0x1]  ;;  %s1306_s4 = scalar_lea.vmem %s934_s16, 16 }
  0x73   :  { %1041 = vmatprep.subr.bf16.mxu0 %v1190_v8  ;;  %1063 = vmatprep.subr.bf16.mxu1 %v1191_v9  ;;  %p1307_p6 = scmp.ne.s32.totalorder %s934_s16, %s1306_s4  ;;  %p1312_p8 = scmp.lt.s32.totalorder %s1310_s17, %s1306_s4 }
  0x75   :  { %526 = vmatmul.mubr.bf16.vlgmr.msra.gmra.mxu0 %v85_v11  ;;  %567 = vmatmul.mubr.bf16.vlgmr.msra.gmra.mxu1 %v85_v11  ;;  %p1313_p9 = por %p1312_p8, %p1311_p7 }
  0x76   :  { %1042 = vmatpush3.bf16.msra.mxu0 %v1192_v10  ;;  %1064 = vmatpush3.bf16.msra.mxu1 %v1193_v12 }
  0x77   :  { %1043 = vmatprep.subr.bf16.mxu0 %v1194_v13  ;;  %1065 = vmatprep.subr.bf16.mxu1 %v1195_v14  ;;  %p1314_p10 = pnand %p1313_p9, %p1307_p6 }
  0x7a   :  { %1044 = vmatpush3.bf16.msra.mxu0 %v1196_v15  ;;  %1066 = vmatpush3.bf16.msra.mxu1 %v1197_v16 }
  0x7b   :  { %1045 = vmatprep.subr.bf16.mxu0 %v1198_v17  ;;  %1067 = vmatprep.subr.bf16.mxu1 %v1199_v18 }
  0x7e   :  { %1046 = vmatpush3.bf16.msra.mxu0 %v1200_v19  ;;  %1068 = vmatpush3.bf16.msra.mxu1 %v1201_v20 }
  0x7f   :  { %1047 = vmatprep.subr.bf16.mxu0 %v1202_v21  ;;  %1069 = vmatprep.subr.bf16.mxu1 %v1203_v22 }
  0x82   :  { %1048 = vmatpush3.bf16.msra.mxu0 %v1204_v23  ;;  %1070 = vmatpush3.bf16.msra.mxu1 %v1205_v24 }
  0x83   :  { %1049 = vmatprep.subr.bf16.mxu0 %v1206_v25  ;;  %1071 = vmatprep.subr.bf16.mxu1 %v1207_v26 }
  0x86   :  { %1050 = vmatpush3.bf16.msra.mxu0 %v1208_v27  ;;  %1072 = vmatpush3.bf16.msra.mxu1 %v1209_v28 }
  0x87   :  { %1051 = vmatprep.subr.bf16.mxu0 %v1210_v29  ;;  %1073 = vmatprep.subr.bf16.mxu1 %v1211_v30 }
  0x8a   :  { %1052 = vmatpush3.bf16.msra.mxu0 %v1212_v31  ;;  %1074 = vmatpush3.bf16.msra.mxu1 %v1213_v32 }
  0x8b   :  { %1053 = vmatprep.subr.bf16.mxu0 %v1214_v33  ;;  %1075 = vmatprep.subr.bf16.mxu1 %v1215_v34 }
  0x8e   :  { %1054 = vmatpush3.bf16.msra.mxu0 %v1216_v35  ;;  %1076 = vmatpush3.bf16.msra.mxu1 %v1217_v36 }
  0x8f   :  { %1055 = vmatprep.subr.bf16.mxu0 %v1218_v37  ;;  %1077 = vmatprep.subr.bf16.mxu1 %v1219_v38 }
  0x92   :  { %1056 = vmatpush3.bf16.msra.mxu0 %v1220_v39  ;;  %1078 = vmatpush3.bf16.msra.mxu1 %v1221_v41 }
 0x135   :  { %v527_v50 = vpop.f32.mrf.mxu0  ;;  %v568_v52 = vpop.f32.mrf.mxu1 }
 0x136   :  { %v528_v53 = vadd.f32 %v527_v50, %v476_v45  ;;  %v569_v54 = vadd.f32 %v568_v52, %v484_v47 }
 0x137   :  { %v529_v55 = vpop.f32.mrf.mxu0  ;;  %v570_v56 = vpop.f32.mrf.mxu1 }
 0x138   :  { %v577_v57 = vmax.f32 %v569_v54, 0.0  ;;  %v530_v58 = vadd.f32 %v529_v55, %v480_v48  ;;  %v571_v59 = vadd.f32 %v570_v56, %v488_v49  ;;  %v575_v60 = vmax.f32 %v528_v53, 0.0 }
 0x139   :  { %v531_v61 = vpop.f32.mrf.mxu0  ;;  %v572_v62 = vpop.f32.mrf.mxu1 }
 0x13a   :  { %v576_v63 = vmax.f32 %v530_v58, 0.0  ;;  %v578_v0 = vmax.f32 %v571_v59, 0.0  ;;  %v581_v51 = vpack.c.bf16 %v577_v57, %v577_v57  ;;  %v579_v3 = vpack.c.bf16 %v575_v60, %v575_v60 }
 0x13b   :  { %v532_v1 = vpop.f32.mrf.mxu0  ;;  %v573_v2 = vpop.f32.mrf.mxu1 }
 0x13c   :  { %v580_v40 = vpack.c.bf16 %v576_v63, %v576_v63  ;;  %v582_v46 = vpack.c.bf16 %v578_v0, %v578_v0 }
 0x13e   :  { %872 = vmatprep.mubr.bf16.mxu0 %v580_v40  ;;  %912 = vmatprep.mubr.bf16.mxu1 %v582_v46 }
 0x13f   :  { %873 = vmatmul.mubr.bf16.vlgmr.msra.gmra.mxu0 %v579_v3  ;;  %913 = vmatmul.mubr.bf16.vlgmr.msra.gmra.mxu1 %v581_v51 }
 0x1ff   :  { %v1057_v4 = vpop.f32.mrf.mxu0  ;;  %v1079_v5 = vpop.f32.mrf.mxu1 }
 0x201   :  { %v1058_v7 = vpop.f32.mrf.mxu0  ;;  %v1080_v8 = vpop.f32.mrf.mxu1 }
 0x202   :  { %v1059_v9 = vadd.f32 %v1058_v7, %v1057_v4  ;;  %v1081_v13 = vadd.f32 %v1080_v8, %v1079_v5 }
 0x203   :  { %v1060_v10 = vpop.f32.mrf.mxu0  ;;  %v1082_v11 = vpop.f32.mrf.mxu1 }
 0x204   :  { %v875_v12 = vadd.f32 %v1059_v9, %v647_v6 }
 0x205   :  { %v1061_v14 = vpop.f32.mrf.mxu0  ;;  %v1083_v15 = vpop.f32.mrf.mxu1 }
 0x206   :  { %v915_v16 = vadd.f32 %v1081_v13, %v875_v12 }
 0x208   :  { %v1040_v17 = vmul.f32 -1.442695, %v915_v16 }
 0x20a   :  { %1222 = vpow2.f32 %v1040_v17 }
 0x217   :  { %v1223_v18 = vpop.eup %1222 }
 0x218   :  { %v923_v19 = vadd.f32 1.0, %v1223_v18 }
 0x21a   :  { %1224 = vrcp.f32 %v923_v19 }
 0x227   :  { %v1225_v20 = vpop.eup %1224 }
 0x228   :  { %926 = vst [vmem:[#allocation10] sm:$0x1] %v1225_v20 }
 0x229   :  { %1317 = shalt.err (!%p1314_p10)
}
 0x22a   :  { %936 = dma.vmem_to_hbm [thread:$0]  %s934_s16, 16, %s1410_s5, [#allocation4]  }
 0x22b   :  { %1332 = dma.done.wait [#allocation4], 16  }
 0x22c   :  { %1333 = vsyncadd [#allocation4], 4294967280 }
 0x22d   :  { %940 = vsyncpa [#allocation3], 1 }
 0x22e   :  { %941 = vsyncpa [#allocation6], 1 }
 0x22f   :  { %942 = vsyncpa [#allocation9], 1 }
 0x230   :  { %943 = vsyncpa [#allocation4], 1 }

</bundles_post_ra>
